<compile_context>
chip_gen: v6e
topology: v6e:2x2x1
jax: 0.10.0
libtpu: 0.0.40
codegen_flags: <defaults>
</compile_context>

<pallas_src>
import jax
import jax.numpy as jnp
from jax.experimental import pallas as pl
from jax.experimental.pallas import tpu as pltpu

INPUT_CHANNELS = 2
NUM_CLASSES = 2
HIDDEN = 256
DEFAULT_TB = 512  # batch tile (lane dim), multiple of 128


def mlp_kernel(x_ref, w1_ref, b1_ref, w2_ref, b2_ref, o_ref):
    # x_ref : (C, TB)   feature-major activations (batch on lanes)
    # w1_ref: (H, C)    fc1.weight (PyTorch layout)
    # b1_ref: (H, 1)
    # w2_ref: (N, H)    fc2.weight (PyTorch layout)
    # b2_ref: (N, 1)
    # o_ref : (N, TB)
    x = x_ref[...]
    w1 = w1_ref[...]

    # fc1 as VPU broadcast-FMAs: K = C = 2 is far too small for the MXU.
    # h[H, TB] = sum_c w1[:, c] (outer) x[c, :]  + b1
    c_dim = x.shape[0]
    h = w1[:, 0:1] * x[0:1, :]
    for c in range(1, c_dim):
        h = h + w1[:, c : c + 1] * x[c : c + 1, :]
    h = h + b1_ref[...]

    # ReLU
    h = jnp.maximum(h, 0.0)

    # dropout(p=0.5): identity in eval/inference mode
    # TODO(synk): train-mode dropout (stochastic masking via pltpu.prng_random_bits) not implemented

    # fc2 on the MXU: (N, H) @ (H, TB) -> (N, TB); full K=256, lane-dense output.
    out = jnp.dot(w2_ref[...], h, preferred_element_type=jnp.float32)
    out = out + b2_ref[...]
    o_ref[...] = out.astype(o_ref.dtype)


def gesture_classifier_forward(x, w1, b1, w2, b2, *, tb=DEFAULT_TB):
    """x: (B, C) f32; w1: (H, C); b1: (H,); w2: (N, H); b2: (N,).

    Returns (B, N) f32, matching the PyTorch forward pass in eval mode.
    """
    B, C = x.shape
    H = w1.shape[0]
    N = w2.shape[0]

    # Feature-major layout: batch on lanes.
    x_t = x.T  # (C, B)

    if B <= tb:
        # Single tile; block shape equals the full array dims (always legal).
        tb_eff = B
        b_pad = B
    else:
        tb_eff = tb  # multiple of 128 -> lane-aligned tiles
        b_pad = pl.cdiv(B, tb_eff) * tb_eff
        if b_pad != B:
            x_t = jnp.pad(x_t, ((0, 0), (0, b_pad - B)))

    grid = (b_pad // tb_eff,)

    b1_2d = b1.reshape(H, 1)
    b2_2d = b2.reshape(N, 1)

    out_t = pl.pallas_call(
        mlp_kernel,
        out_shape=jax.ShapeDtypeStruct((N, b_pad), jnp.float32),
        grid_spec=pl.GridSpec(
            grid=grid,
            in_specs=[
                # x tile walks the batch (lane) axis.
                pl.BlockSpec((C, tb_eff), lambda i: (0, i)),
                # Weights / biases: same block every step -> stay resident in VMEM.
                pl.BlockSpec((H, C), lambda i: (0, 0)),
                pl.BlockSpec((H, 1), lambda i: (0, 0)),
                pl.BlockSpec((N, H), lambda i: (0, 0)),
                pl.BlockSpec((N, 1), lambda i: (0, 0)),
            ],
            out_specs=pl.BlockSpec((N, tb_eff), lambda i: (0, i)),
        ),
        compiler_params=pltpu.CompilerParams(
            # Batch tiles are independent -> shardable across TCs (v7x megacore).
            dimension_semantics=("parallel",)
        ),
    )(x_t, w1, b1_2d, w2, b2_2d)

    # Drop padding, back to (B, N).
    return out_t[:, :B].T


def init_params(key):
    """Deterministic synthetic parameters in native nn.Linear shapes."""
    k1, k2, k3, k4 = jax.random.split(key, 4)
    bound1 = 1.0 / (INPUT_CHANNELS ** 0.5)
    bound2 = 1.0 / (HIDDEN ** 0.5)
    w1 = jax.random.uniform(k1, (HIDDEN, INPUT_CHANNELS), jnp.float32, -bound1, bound1)
    b1 = jax.random.uniform(k2, (HIDDEN,), jnp.float32, -bound1, bound1)
    w2 = jax.random.uniform(k3, (NUM_CLASSES, HIDDEN), jnp.float32, -bound2, bound2)
    b2 = jax.random.uniform(k4, (NUM_CLASSES,), jnp.float32, -bound2, bound2)
    return w1, b1, w2, b2


def _reference(x, w1, b1, w2, b2):
    # Plain-JAX reference with PyTorch weight layout.
    h = jnp.maximum(x @ w1.T + b1, 0.0)
    return h @ w2.T + b2


if __name__ == "__main__":
    key = jax.random.PRNGKey(0)
    kx, kp, kx2 = jax.random.split(key, 3)
    w1, b1, w2, b2 = init_params(kp)

    # Small-batch path (single tile, block == full array dims).
    B = 8
    x = jax.random.normal(kx, (B, INPUT_CHANNELS), jnp.float32)
    out = jax.block_until_ready(gesture_classifier_forward(x, w1, b1, w2, b2))
    ref = _reference(x, w1, b1, w2, b2)
    assert out.shape == (B, NUM_CLASSES)
    assert jnp.allclose(out, ref, atol=1e-5, rtol=1e-5)

    # Tiled + padded path (B > TB, exercises the batch grid / padding logic).
    B2 = 640  # pads to 1024 with TB=512, grid=(2,)
    x2 = jax.random.normal(kx2, (B2, INPUT_CHANNELS), jnp.float32)
    out2 = jax.block_until_ready(gesture_classifier_forward(x2, w1, b1, w2, b2))
    ref2 = _reference(x2, w1, b1, w2, b2)
    assert out2.shape == (B2, NUM_CLASSES)
    assert jnp.allclose(out2, ref2, atol=1e-5, rtol=1e-5)

    print("KERNEL_OK")
</pallas_src>

<mosaic_0001>
module attributes {stable_mosaic.version = 11 : i64} {
  func.func @mlp_kernel(%arg0: i32, %arg1: memref<2x8xf32, #tpu.memory_space<vmem>>, %arg2: memref<256x2xf32, #tpu.memory_space<vmem>>, %arg3: memref<256x1xf32, #tpu.memory_space<vmem>>, %arg4: memref<2x256xf32, #tpu.memory_space<vmem>>, %arg5: memref<2x1xf32, #tpu.memory_space<vmem>>, %arg6: memref<2x8xf32, #tpu.memory_space<vmem>>) attributes {dimension_semantics = [#tpu.dimension_semantics<parallel>], iteration_bounds = array<i64: 1>, scalar_prefetch = 0 : i64, scratch_operands = 0 : i64, tpu.core_type = #tpu.core_type<tc>, window_params = [{transform_indices = @transform_0, window_bounds = array<i64: 2, 8>}, {pipeline_mode = #tpu.pipeline_mode<synchronous>, transform_indices = @transform_1, window_bounds = array<i64: 256, 2>}, {pipeline_mode = #tpu.pipeline_mode<synchronous>, transform_indices = @transform_2, window_bounds = array<i64: 256, 1>}, {pipeline_mode = #tpu.pipeline_mode<synchronous>, transform_indices = @transform_3, window_bounds = array<i64: 2, 256>}, {pipeline_mode = #tpu.pipeline_mode<synchronous>, transform_indices = @transform_4, window_bounds = array<i64: 2, 1>}, {transform_indices = @transform_5, window_bounds = array<i64: 2, 8>}]} {
    %c0 = arith.constant 0 : index
    %c0_0 = arith.constant 0 : index
    %0 = vector.load %arg1[%c0, %c0_0] : memref<2x8xf32, #tpu.memory_space<vmem>>, vector<2x8xf32>
    %c0_1 = arith.constant 0 : index
    %c0_2 = arith.constant 0 : index
    %1 = vector.load %arg2[%c0_1, %c0_2] : memref<256x2xf32, #tpu.memory_space<vmem>>, vector<256x2xf32>
    %2 = vector.extract_strided_slice %1 {offsets = [0, 0], sizes = [256, 1], strides = [1, 1]} : vector<256x2xf32> to vector<256x1xf32>
    %3 = vector.extract_strided_slice %0 {offsets = [0, 0], sizes = [1, 8], strides = [1, 1]} : vector<2x8xf32> to vector<1x8xf32>
    %4 = vector.broadcast %2 : vector<256x1xf32> to vector<256x8xf32>
    %5 = vector.broadcast %3 : vector<1x8xf32> to vector<256x8xf32>
    %6 = arith.mulf %4, %5 : vector<256x8xf32>
    %7 = vector.extract_strided_slice %1 {offsets = [0, 1], sizes = [256, 1], strides = [1, 1]} : vector<256x2xf32> to vector<256x1xf32>
    %8 = vector.extract_strided_slice %0 {offsets = [1, 0], sizes = [1, 8], strides = [1, 1]} : vector<2x8xf32> to vector<1x8xf32>
    %9 = vector.broadcast %7 : vector<256x1xf32> to vector<256x8xf32>
    %10 = vector.broadcast %8 : vector<1x8xf32> to vector<256x8xf32>
    %11 = arith.mulf %9, %10 : vector<256x8xf32>
    %12 = arith.addf %6, %11 : vector<256x8xf32>
    %c0_3 = arith.constant 0 : index
    %c0_4 = arith.constant 0 : index
    %13 = vector.load %arg3[%c0_3, %c0_4] : memref<256x1xf32, #tpu.memory_space<vmem>>, vector<256x1xf32>
    %14 = vector.broadcast %13 : vector<256x1xf32> to vector<256x8xf32>
    %15 = arith.addf %12, %14 : vector<256x8xf32>
    %cst = arith.constant 0.000000e+00 : f32
    %16 = vector.broadcast %cst : f32 to vector<256x8xf32>
    %17 = arith.maximumf %15, %16 : vector<256x8xf32>
    %c0_5 = arith.constant 0 : index
    %c0_6 = arith.constant 0 : index
    %18 = vector.load %arg4[%c0_5, %c0_6] : memref<2x256xf32, #tpu.memory_space<vmem>>, vector<2x256xf32>
    %cst_7 = arith.constant dense<0.000000e+00> : vector<2x8xf32>
    %19 = tpu.matmul %18, %17, %cst_7 {dimension_numbers = #tpu.dot_dimension_numbers<[1], [0], [0], [1], [0, 0, 1, 1], [], []>} : vector<2x256xf32>, vector<256x8xf32>, vector<2x8xf32> -> vector<2x8xf32>
    %c0_8 = arith.constant 0 : index
    %c0_9 = arith.constant 0 : index
    %20 = vector.load %arg5[%c0_8, %c0_9] : memref<2x1xf32, #tpu.memory_space<vmem>>, vector<2x1xf32>
    %21 = vector.broadcast %20 : vector<2x1xf32> to vector<2x8xf32>
    %22 = arith.addf %19, %21 : vector<2x8xf32>
    %c0_10 = arith.constant 0 : index
    %c0_11 = arith.constant 0 : index
    %23 = vector.load %arg6[%c0_10, %c0_11] : memref<2x8xf32, #tpu.memory_space<vmem>>, vector<2x8xf32>
    tpu.vector_store %arg6[%c0_10, %c0_11], %22 {strides = array<i32>} : memref<2x8xf32, #tpu.memory_space<vmem>>, vector<2x8xf32>,
    return
  }
  func.func @transform_0(%arg0: i32) -> (i32, i32) {
    %c0_i32 = arith.constant 0 : i32
    %c0_i32_0 = arith.constant 0 : i32
    return %c0_i32, %arg0 : i32, i32
  }
  func.func @transform_1(%arg0: i32) -> (i32, i32) {
    %c0_i32 = arith.constant 0 : i32
    %c0_i32_0 = arith.constant 0 : i32
    %c0_i32_1 = arith.constant 0 : i32
    return %c0_i32, %c0_i32_0 : i32, i32
  }
  func.func @transform_2(%arg0: i32) -> (i32, i32) {
    %c0_i32 = arith.constant 0 : i32
    %c0_i32_0 = arith.constant 0 : i32
    %c0_i32_1 = arith.constant 0 : i32
    return %c0_i32, %c0_i32_0 : i32, i32
  }
  func.func @transform_3(%arg0: i32) -> (i32, i32) {
    %c0_i32 = arith.constant 0 : i32
    %c0_i32_0 = arith.constant 0 : i32
    %c0_i32_1 = arith.constant 0 : i32
    return %c0_i32, %c0_i32_0 : i32, i32
  }
  func.func @transform_4(%arg0: i32) -> (i32, i32) {
    %c0_i32 = arith.constant 0 : i32
    %c0_i32_0 = arith.constant 0 : i32
    %c0_i32_1 = arith.constant 0 : i32
    return %c0_i32, %c0_i32_0 : i32, i32
  }
  func.func @transform_5(%arg0: i32) -> (i32, i32) {
    %c0_i32 = arith.constant 0 : i32
    %c0_i32_0 = arith.constant 0 : i32
    return %c0_i32, %arg0 : i32, i32
  }
}

</mosaic_0001>

<bundles_post_ra>
// kernel: tpu_custom_call.1
= control target key start
LH: loop header
LB: loop body
LE: loop exit
PB: predicated region body
PF: predicated region fallthrough
CT: control target
= control target key end

     0   :  { %v890_v2 = vmov 1   ;;  %v891_v3 = vmov 0   ;;  %s1425_s0 = inlined_call_operand.vmem [shape: f32[2,8], index: 0, kind: input, shape index: {}]   ;;  %s1426_s1 = inlined_call_operand.vmem [shape: f32[256,2], index: 1, kind: input, shape index: {}]   ;;  %s1427_s2 = inlined_call_operand.vmem [shape: f32[256,1], index: 2, kind: input, shape index: {}]   ;;  %s1428_s3 = inlined_call_operand.vmem [shape: f32[2,256], index: 3, kind: input, shape index: {}]   ;;  %s1429_s4 = inlined_call_operand.vmem [shape: f32[2,1], index: 4, kind: input, shape index: {}]   ;;  %s1430_s5 = inlined_call_operand.hbm [shape: f32[2,8], index: 5, kind: output, shape index: {}]  }
   0x1   :  { %v37_v0 = vld [vmem:[%s1426_s1 + $0x78] sm:$0xff]  ;;  %v929_v1 = vld [vmem:[%s1426_s1 + $0x10] sm:$0xff]  ;;  %847 = vset.pattern.permute.xlu0 %v890_v2  ;;  %845 = vset.pattern.permute.xlu1 %v891_v3  ;;  %v51_v6 = vld [vmem:[%s1426_s1 + $0xe8] sm:$0xff] }
   0x2   :  { %311 = vperm.xlu0 %847, %v37_v0   ;;  %66 = vperm.xlu1 %845, %v929_v1   ;;  %v937_v4 = vld [vmem:[%s1426_s1 + $0x70] sm:$0xff]  ;;  %v25_v5 = vld [vmem:[%s1426_s1 + $0x18] sm:$0xff]  ;;  %v949_v7 = vld [vmem:[%s1426_s1 + $0x28] sm:$0xff] }
   0x3   :  { %v35_v8 = vld [vmem:[%s1426_s1 + $0x68] sm:$0xff]  ;;  %v29_v9 = vld [vmem:[%s1426_s1 + $0x38] sm:$0xff]  ;;  %v961_v10 = vld [vmem:[%s1426_s1 + $0x60] sm:$0xff] }
   0x4   :  { %v31_v11 = vld [vmem:[%s1426_s1 + $0x48] sm:$0xff] }
   0x6   :  { %307 = vperm.xlu0 %847, %v937_v4   ;;  %71 = vperm.xlu1 %845, %v25_v5  }
   0xa   :  { %367 = vperm.xlu0 %847, %v51_v6   ;;  %81 = vperm.xlu1 %845, %v949_v7  }
   0xe   :  { %303 = vperm.xlu0 %847, %v35_v8   ;;  %91 = vperm.xlu1 %845, %v29_v9  }
   0xf   :  { %10 = vsyncpa [#allocation3], 0  ;;  %v49_v12 = vld [vmem:[%s1426_s1 + $0xd8] sm:$0xff]  ;;  %v32_v14 = vld [vmem:[%s1426_s1 + $0x50] sm:$0xff]  ;;  %vm790_vm0 = vcmask 58368  }
  0x10   :  { %v33_v13 = vld [vmem:[%s1426_s1 + $0x58] sm:$0xff]  ;;  %v979_v15 = vld [vmem:[%s1426_s1 + $0xc8] sm:$0xff]  ;;  %v30_v18 = vld [vmem:[%s1426_s1 + $0x40] sm:$0xff] }
  0x11   :  { %v39_v16 = vld [vmem:[%s1426_s1 + $0x88] sm:$0xff]  ;;  %v988_v17 = vld [vmem:[%s1426_s1 + $0x98] sm:$0xff]  ;;  %v52_v22 = vld [vmem:[%s1426_s1 + $0xf0] sm:$0xff] }
  0x12   :  { %299 = vperm.xlu0 %847, %v961_v10   ;;  %101 = vperm.xlu1 %845, %v31_v11   ;;  %v997_v19 = vld [vmem:[%s1426_s1 + $0xa8] sm:$0xff]  ;;  %v1003_v20 = vld [vmem:[%s1426_s1 + $0xb8] sm:$0xff]  ;;  %v28_v23 = vld [vmem:[%s1426_s1 + $0x30] sm:$0xff] }
  0x13   :  { %v1008_v21 = vld [vmem:[%s1426_s1 + $0xf8] sm:$0xff]  ;;  %v42_v24 = vld [vmem:[%s1426_s1 + $0xa0] sm:$0xff]  ;;  %v1042_v29 = vld [vmem:[%s1426_s1 + $0x8] sm:$0xff] }
  0x14   :  { %v477_v25 = vld [vmem:[%s1427_s2 + $0xf8] sm:$0xff]  ;;  %v22_v27 = vld [vmem:[%s1426_s1] sm:$0xff]  ;;  %v476_v30 = vld [vmem:[%s1427_s2 + $0xf0] sm:$0xff] }
  0x15   :  { %v461_v26 = vld [vmem:[%s1427_s2 + $0x78] sm:$0xff]  ;;  %v50_v28 = vld [vmem:[%s1426_s1 + $0xe0] sm:$0xff]  ;;  %v460_v32 = vld [vmem:[%s1427_s2 + $0x70] sm:$0xff] }
  0x16   :  { %359 = vperm.xlu0 %847, %v49_v12   ;;  %111 = vperm.xlu1 %845, %v33_v13   ;;  %v1052_v31 = vld [vmem:[%s1426_s1 + $0x20] sm:$0xff]  ;;  %v475_v33 = vld [vmem:[%s1427_s2 + $0xe8] sm:$0xff]  ;;  %v48_v35 = vld [vmem:[%s1426_s1 + $0xd0] sm:$0xff] }
  0x17   :  { %v459_v34 = vld [vmem:[%s1427_s2 + $0x68] sm:$0xff]  ;;  %v474_v36 = vld [vmem:[%s1427_s2 + $0xe0] sm:$0xff]  ;;  %v1086_v39 = vld [vmem:[%s1426_s1 + $0x90] sm:$0xff] }
  0x18   :  { %v1076_v37 = vld [vmem:[%s1426_s1 + $0x80] sm:$0xff]  ;;  %v473_v40 = vld [vmem:[%s1427_s2 + $0xd8] sm:$0xff]  ;;  %v472_v47 = vld [vmem:[%s1427_s2 + $0xd0] sm:$0xff] }
  0x19   :  { %v458_v38 = vld [vmem:[%s1427_s2 + $0x60] sm:$0xff]  ;;  %v457_v41 = vld [vmem:[%s1427_s2 + $0x58] sm:$0xff]  ;;  %v44_v48 = vld [vmem:[%s1426_s1 + $0xb0] sm:$0xff] }
  0x1a   :  { %295 = vperm.xlu0 %847, %v33_v13   ;;  %121 = vperm.xlu1 %845, %v35_v8   ;;  %v46_v42 = vld [vmem:[%s1426_s1 + $0xc0] sm:$0xff]  ;;  %v456_v51 = vld [vmem:[%s1427_s2 + $0x50] sm:$0xff]  ;;  %v469_v52 = vld [vmem:[%s1427_s2 + $0xb8] sm:$0xff] }
  0x1b   :  { %v452_v55 = vld [vmem:[%s1427_s2 + $0x30] sm:$0xff]  ;;  %v471_v58 = vld [vmem:[%s1427_s2 + $0xc8] sm:$0xff]  ;;  %v466_v59 = vld [vmem:[%s1427_s2 + $0xa0] sm:$0xff] }
  0x1c   :  { %v455_v62 = vld [vmem:[%s1427_s2 + $0x48] sm:$0xff]  ;;  %v449_v63 = vld [vmem:[%s1427_s2 + $0x18] sm:$0xff]  ;;  %v454_v13 = vld [vmem:[%s1427_s2 + $0x40] sm:$0xff] }
  0x1e   :  { %291 = vperm.xlu0 %847, %v32_v14   ;;  %131 = vperm.xlu1 %845, %v37_v0  }
  0x22   :  { %351 = vperm.xlu0 %847, %v979_v15   ;;  %141 = vperm.xlu1 %845, %v39_v16  }
  0x26   :  { %287 = vperm.xlu0 %847, %v31_v11   ;;  %151 = vperm.xlu1 %845, %v988_v17  }
  0x2a   :  { %283 = vperm.xlu0 %847, %v30_v18   ;;  %161 = vperm.xlu1 %845, %v997_v19  }
  0x2e   :  { %343 = vperm.xlu0 %847, %v1003_v20   ;;  %846 = vset.pattern.permute.xlu1 %v890_v2 }
  0x2f   :  { %375 = vperm.xlu1 %846, %v1008_v21  }
  0x32   :  { %279 = vperm.xlu0 %847, %v29_v9   ;;  %v470_v9 = vld [vmem:[%s1427_s2 + $0xc0] sm:$0xff] }
  0x33   :  { %848 = vset.pattern.permute.xlu1 %v891_v3 }
  0x34   :  { %206 = vperm.xlu1 %848, %v52_v22  }
  0x36   :  { %275 = vperm.xlu0 %847, %v28_v23  }
  0x38   :  { %849 = vset.pattern.permute.xlu1 %v890_v2 }
  0x39   :  { %371 = vperm.xlu1 %849, %v52_v22  }
  0x3a   :  { %331 = vperm.xlu0 %847, %v42_v24  }
  0x3d   :  { %850 = vset.pattern.permute.xlu1 %v891_v3 }
  0x3e   :  { %263 = vperm.xlu0 %847, %v25_v5   ;;  %201 = vperm.xlu1 %850, %v51_v6   ;;  %v447_v5 = vld [vmem:[%s1427_s2 + $0x8] sm:$0xff] }
  0x42   :  { %319 = vperm.xlu0 %847, %v39_v16   ;;  %635 = vperm.xlu1 %850, %v477_v25   ;;  %v214_v25 = vlaneseq }
  0x46   :  { %555 = vperm.xlu1 %850, %v461_v26   ;;  %251 = vperm.xlu0 %847, %v22_v27  }
  0x4a   :  { %851 = vset.pattern.permute.xlu1 %v890_v2  ;;  %867 = vset.pattern.permute.xlu0 %v891_v3 }
  0x4b   :  { %363 = vperm.xlu1 %851, %v50_v28   ;;  %56 = vperm.xlu0 %867, %v22_v27   ;;  %v215_v27 = vshrl.u32 %v214_v25, 7 }
  0x4f   :  { %852 = vset.pattern.permute.xlu1 %v891_v3  ;;  %61 = vperm.xlu0 %867, %v1042_v29  }
  0x50   :  { %630 = vperm.xlu1 %852, %v476_v30   ;;  %v380_v30 = vsub.s32 1, %v215_v27 }
  0x53   :  { %76 = vperm.xlu0 %867, %v1052_v31  }
  0x54   :  { %550 = vperm.xlu1 %852, %v460_v32   ;;  %v216_v32 = vsub.s32 0, %v215_v27 }
  0x57   :  { %86 = vperm.xlu0 %867, %v28_v23   ;;  %v453_v23 = vld [vmem:[%s1427_s2 + $0x38] sm:$0xff] }
  0x58   :  { %191 = vperm.xlu1 %852, %v49_v12  }
  0x5b   :  { %96 = vperm.xlu0 %867, %v30_v18  }
  0x5c   :  { %625 = vperm.xlu1 %852, %v475_v33   ;;  %v21_v33 = vld [vmem:[%s1425_s0] sm:$0x3] }
  0x5f   :  { %106 = vperm.xlu0 %867, %v32_v14  }
  0x60   :  { %545 = vperm.xlu1 %852, %v459_v34  }
  0x63   :  { %116 = vperm.xlu0 %867, %v961_v10   ;;  %v703_v10 = vld [vmem:[%s1429_s4] sm:$0x3] }
  0x64   :  { %853 = vset.pattern.permute.xlu1 %v890_v2 }
  0x65   :  { %355 = vperm.xlu1 %853, %v48_v35  }
  0x67   :  { %126 = vperm.xlu0 %867, %v937_v4  }
  0x69   :  { %854 = vset.pattern.permute.xlu1 %v891_v3 }
  0x6a   :  { %620 = vperm.xlu1 %854, %v474_v36   ;;  %v1215_v36 = vrot.slane %v21_v33, %v380_v30 }
  0x6b   :  { %136 = vperm.xlu0 %867, %v1076_v37  }
  0x6e   :  { %540 = vperm.xlu1 %854, %v458_v38   ;;  %v1217_v38 = vrot.slane %v21_v33, %v216_v32 }
  0x6f   :  { %146 = vperm.xlu0 %867, %v1086_v39  }
  0x72   :  { %181 = vperm.xlu1 %854, %v979_v15  }
  0x73   :  { %156 = vperm.xlu0 %867, %v42_v24  }
  0x76   :  { %615 = vperm.xlu1 %854, %v473_v40  }
  0x77   :  { %211 = vperm.xlu0 %867, %v1008_v21  }
  0x7a   :  { %535 = vperm.xlu1 %854, %v457_v41  }
  0x7b   :  { %196 = vperm.xlu0 %867, %v50_v28  }
  0x7d   :  { %v1100_v43 = vpop.permute.xlu0 %311  ;;  %v1102_v44 = vpop.permute.xlu1 %66 }
  0x7e   :  { %1431 = vst [vmem:[#allocation5_spill] sm:$0xff] %v1102_v44  ;;  %855 = vset.pattern.permute.xlu1 %v890_v2 }
  0x7f   :  { %347 = vperm.xlu1 %855, %v46_v42   ;;  %186 = vperm.xlu0 %867, %v48_v35  }
  0x81   :  { %v1105_v45 = vpop.permute.xlu0 %307  ;;  %v1107_v46 = vpop.permute.xlu1 %71 }
  0x83   :  { %856 = vset.pattern.permute.xlu1 %v891_v3  ;;  %176 = vperm.xlu0 %867, %v46_v42  }
  0x84   :  { %610 = vperm.xlu1 %856, %v472_v47  }
  0x85   :  { %v1116_v49 = vpop.permute.xlu0 %367  ;;  %v1118_v50 = vpop.permute.xlu1 %81 }
  0x87   :  { %166 = vperm.xlu0 %867, %v44_v48  }
  0x88   :  { %530 = vperm.xlu1 %856, %v456_v51  }
  0x89   :  { %v1126_v53 = vpop.permute.xlu0 %303  ;;  %v1128_v54 = vpop.permute.xlu1 %91 }
  0x8b   :  { %595 = vperm.xlu0 %867, %v469_v52  }
  0x8c   :  { %171 = vperm.xlu1 %856, %v1003_v20  }
  0x8d   :  { %v1134_v56 = vpop.permute.xlu0 %299  ;;  %v1136_v57 = vpop.permute.xlu1 %101 }
  0x8f   :  { %510 = vperm.xlu0 %867, %v452_v55  }
  0x90   :  { %605 = vperm.xlu1 %856, %v471_v58  }
  0x91   :  { %v1144_v60 = vpop.permute.xlu0 %359  ;;  %v1146_v61 = vpop.permute.xlu1 %111 }
  0x93   :  { %580 = vperm.xlu0 %867, %v466_v59  }
  0x94   :  { %525 = vperm.xlu1 %856, %v455_v62  }
  0x95   :  { %v1154_v0 = vpop.permute.xlu0 %295  ;;  %v1156_v4 = vpop.permute.xlu1 %121 }
  0x97   :  { %495 = vperm.xlu0 %867, %v449_v63  }
  0x98   :  { %857 = vset.pattern.permute.xlu1 %v890_v2 }
  0x99   :  { %v1162_v6 = vpop.permute.xlu0 %291  ;;  %339 = vperm.xlu1 %857, %v44_v48   ;;  %v1164_v8 = vpop.permute.xlu1 %131  ;;  %v467_v48 = vld [vmem:[%s1427_s2 + $0xa8] sm:$0xff] }
  0x9b   :  { %485 = vperm.xlu0 %867, %v447_v5  }
  0x9d   :  { %v1172_v11 = vpop.permute.xlu0 %351  ;;  %858 = vset.pattern.permute.xlu1 %v891_v3  ;;  %v142_v12 = vpop.permute.xlu1 %141 }
  0x9e   :  { %600 = vperm.xlu1 %858, %v470_v9   ;;  %v235_v42 = vmul.f32 %v1217_v38, %v142_v12 }
  0x9f   :  { %706 = vperm.xlu0 %867, %v703_v10  }
  0xa1   :  { %v1178_v14 = vpop.permute.xlu0 %287  ;;  %v1180_v15 = vpop.permute.xlu1 %151 }
  0xa2   :  { %520 = vperm.xlu1 %858, %v454_v13  }
  0xa5   :  { %v284_v16 = vpop.permute.xlu0 %283  ;;  %v1182_v18 = vpop.permute.xlu1 %161 }
  0xa6   :  { %859 = vset.pattern.permute.xlu1 %v890_v2  ;;  %v390_v27 = vmul.f32 %v1215_v36, %v284_v16 }
  0xa7   :  { %335 = vperm.xlu1 %859, %v997_v19   ;;  %v468_v19 = vld [vmem:[%s1427_s2 + $0xb0] sm:$0xff] }
  0xa9   :  { %v1186_v20 = vpop.permute.xlu0 %343 }
  0xaa   :  { %v1188_v21 = vpop.permute.xlu1 %375 }
  0xab   :  { %271 = vperm.xlu1 %859, %v949_v7  }
  0xad   :  { %v1191_v22 = vpop.permute.xlu0 %279 }
  0xaf   :  { %860 = vset.pattern.permute.xlu1 %v891_v3  ;;  %v1197_v24 = vpop.permute.xlu1 %206 }
  0xb0   :  { %515 = vperm.xlu1 %860, %v453_v23   ;;  %v450_v23 = vld [vmem:[%s1427_s2 + $0x20] sm:$0xff] }
  0xb1   :  { %v276_v26 = vpop.permute.xlu0 %275 }
  0xb2   :  { %v388_v13 = vmul.f32 %v1215_v36, %v276_v26 }
  0xb4   :  { %590 = vperm.xlu1 %860, %v468_v19   ;;  %v1202_v7 = vpop.permute.xlu1 %371 }
  0xb5   :  { %v1204_v28 = vpop.permute.xlu0 %331 }
  0xb8   :  { %861 = vset.pattern.permute.xlu1 %v890_v2 }
  0xb9   :  { %v1210_v34 = vpop.permute.xlu0 %263  ;;  %267 = vperm.xlu1 %861, %v1052_v31   ;;  %v1213_v35 = vpop.permute.xlu1 %201 }
  0xbd   :  { %v320_v40 = vpop.permute.xlu0 %319  ;;  %327 = vperm.xlu1 %861, %v988_v17   ;;  %v1220_v41 = vpop.permute.xlu1 %635  ;;  %v451_v17 = vld [vmem:[%s1427_s2 + $0x28] sm:$0xff] }
  0xbe   :  { %v399_v47 = vmul.f32 %v1215_v36, %v320_v40 }
  0xc0   :  { %v1227_v31 = vadd.f32 %v399_v47, %v235_v42 }
  0xc1   :  { %862 = vset.pattern.permute.xlu1 %v891_v3  ;;  %v1230_v51 = vpop.permute.xlu1 %555  ;;  %v252_v52 = vpop.permute.xlu0 %251 }
  0xc2   :  { %1432 = vst [vmem:[#allocation6_spill] sm:$0xff] %v1227_v31  ;;  %585 = vperm.xlu1 %862, %v467_v48   ;;  %v382_v55 = vmul.f32 %v1215_v36, %v252_v52 }
  0xc6   :  { %505 = vperm.xlu1 %862, %v451_v17   ;;  %v1236_v58 = vpop.permute.xlu1 %363  ;;  %v57_v59 = vpop.permute.xlu0 %56  ;;  %v464_v17 = vld [vmem:[%s1427_s2 + $0x90] sm:$0xff] }
  0xc7   :  { %v218_v62 = vmul.f32 %v1217_v38, %v57_v59 }
  0xc9   :  { %v1239_v63 = vadd.f32 %v382_v55, %v218_v62  ;;  %v463_v62 = vld [vmem:[%s1427_s2 + $0x88] sm:$0xff] }
  0xca   :  { %863 = vset.pattern.permute.xlu1 %v890_v2  ;;  %v1242_v5 = vpop.permute.xlu0 %61 }
  0xcb   :  { %1433 = vst [vmem:[#allocation7_spill] sm:$0xff] %v1239_v63  ;;  %1434 = vst [vmem:[#allocation8_spill] sm:$0xff] %v1242_v5  ;;  %323 = vperm.xlu1 %863, %v1086_v39   ;;  %v1245_v9 = vpop.permute.xlu1 %630 }
  0xce   :  { %v1247_v10 = vpop.permute.xlu0 %76 }
  0xcf   :  { %259 = vperm.xlu1 %863, %v929_v1   ;;  %v1250_v12 = vpop.permute.xlu1 %550  ;;  %v465_v1 = vld [vmem:[%s1427_s2 + $0x98] sm:$0xff] }
  0xd2   :  { %v87_v25 = vpop.permute.xlu0 %86 }
  0xd3   :  { %v224_v19 = vmul.f32 %v1217_v38, %v87_v25  ;;  %864 = vset.pattern.permute.xlu1 %v891_v3  ;;  %v1258_v39 = vpop.permute.xlu1 %191 }
  0xd4   :  { %500 = vperm.xlu1 %864, %v450_v23   ;;  %v402_v23 = vmul.f32 %v1215_v36, %v1204_v28  ;;  %v411_v28 = vmul.f32 %v1215_v36, %v1116_v49  ;;  %v231_v49 = vmul.f32 %v1217_v38, %v1156_v4 }
  0xd5   :  { %v1264_v30 = vadd.f32 %v388_v13, %v224_v19  ;;  %v462_v19 = vld [vmem:[%s1427_s2 + $0x80] sm:$0xff] }
  0xd6   :  { %v97_v26 = vpop.permute.xlu0 %96 }
  0xd7   :  { %v226_v32 = vmul.f32 %v1217_v38, %v97_v26  ;;  %v1267_v33 = vpop.permute.xlu1 %625  ;;  %v412_v26 = vmul.f32 %v1215_v36, %v1202_v7  ;;  %v395_v7 = vmul.f32 %v1215_v36, %v1126_v53 }
  0xd8   :  { %575 = vperm.xlu1 %864, %v465_v1   ;;  %v233_v1 = vmul.f32 %v1217_v38, %v1164_v8  ;;  %v248_v8 = vmul.f32 %v1217_v38, %v1197_v24  ;;  %v1336_v24 = vld.sshfl [vmem:[%s1428_s3] sm:$0x33 pattern:$0x76325410] }
  0xd9   :  { %v1269_v40 = vadd.f32 %v390_v27, %v226_v32  ;;  %v397_v27 = vmul.f32 %v1215_v36, %v1100_v43  ;;  %v396_v43 = vmul.f32 %v1215_v36, %v1105_v45  ;;  %v446_v45 = vld [vmem:[%s1427_s2] sm:$0xff]  ;;  %v717_v4 = vcombine.high %v1336_v24, %v1336_v24 }
  0xda   :  { %v1271_v42 = vpop.permute.xlu0 %106 }
  0xdb   :  { %v1273_v47 = vpop.permute.xlu1 %545  ;;  %784 = vmatprep.mubr.f32.mxu0 %v717_v4 }
  0xdc   :  { %865 = vset.pattern.permute.xlu1 %v890_v2  ;;  %v448_v2 = vld [vmem:[%s1427_s2 + $0x10] sm:$0xff]  ;;  %s892_s2 = smov [#allocation2]  }
  0xdd   :  { %255 = vperm.xlu1 %865, %v1042_v29   ;;  %s798_s3 = sshll.u32 %s892_s2, 4  ;;  %s799_s3 = int_to_ptr.vmem [resolvable:$true] %s798_s3 }
  0xde   :  { %v117_v16 = vpop.permute.xlu0 %116  ;;  %s868_s23 = scalar_lea.vmem %s799_s3, 32  ;;  %p873_p1 = scmp.lt.s32.totalorder %s799_s3, %s799_s3 }
  0xdf   :  { %v230_v5 = vmul.f32 %v1217_v38, %v117_v16  ;;  %v427_v16 = vadd.f32 %v395_v7, %v231_v49  ;;  %p869_p0 = scmp.ne.s32.totalorder %s799_s3, %s868_s23  ;;  %p874_p2 = scmp.lt.s32.totalorder %s868_s23, %s868_s23 }
  0xe0   :  { %v1277_v48 = vpop.permute.xlu1 %355 }
  0xe1   :  { %315 = vperm.xlu1 %865, %v1076_v37   ;;  %p875_p3 = por %p874_p2, %p873_p1 }
  0xe2   :  { %v127_v52 = vpop.permute.xlu0 %126 }
  0xe3   :  { %v232_v32 = vmul.f32 %v1217_v38, %v127_v52  ;;  %p876_p4 = pnand %p875_p3, %p869_p0 }
  0xe5   :  { %v1283_v55 = vpop.permute.xlu1 %620  ;;  %866 = vset.pattern.permute.xlu1 %v891_v3  ;;  %v428_v53 = vadd.f32 %v396_v43, %v232_v32 }
  0xe6   :  { %570 = vperm.xlu1 %866, %v464_v17   ;;  %v1286_v59 = vpop.permute.xlu0 %136  ;;  %v247_v17 = vmul.f32 %v1217_v38, %v1213_v35  ;;  %v413_v35 = vmul.f32 %v1215_v36, %v1188_v21  ;;  %v409_v21 = vmul.f32 %v1215_v36, %v1144_v60 }
  0xe7   :  { %1435 = vst [vmem:[#allocation9_spill] sm:$0xff] %v1286_v59  ;;  %v652_v32 = vadd.f32 %v1250_v12, %v428_v53 }
  0xe9   :  { %v1291_v29 = vpop.permute.xlu1 %540 }
  0xea   :  { %490 = vperm.xlu1 %866, %v448_v2   ;;  %v1293_v37 = vpop.permute.xlu0 %146 }
  0xed   :  { %v1298_v13 = vpop.permute.xlu1 %181 }
  0xee   :  { %565 = vperm.xlu1 %866, %v463_v62   ;;  %v157_v3 = vpop.permute.xlu0 %156 }
  0xef   :  { %v238_v25 = vmul.f32 %v1217_v38, %v157_v3 }
  0xf1   :  { %v616_v2 = vpop.permute.xlu1 %615  ;;  %v1317_v62 = vadd.f32 %v402_v23, %v238_v25  ;;  %v429_v23 = vadd.f32 %v397_v27, %v233_v1  ;;  %v444_v25 = vadd.f32 %v412_v26, %v248_v8  ;;  %v410_v27 = vmul.f32 %v1215_v36, %v1236_v58 }
  0xf2   :  { %560 = vperm.xlu1 %866, %v462_v19   ;;  %v212_v3 = vpop.permute.xlu0 %211  ;;  %v443_v19 = vadd.f32 %v411_v28, %v247_v17  ;;  %v245_v1 = vmul.f32 %v1217_v38, %v1258_v39  ;;  %v229_v28 = vmul.f32 %v1217_v38, %v1146_v61 }
  0xf3   :  { %v249_v52 = vmul.f32 %v1217_v38, %v212_v3  ;;  %v653_v31 = vadd.f32 %v1230_v51, %v429_v23  ;;  %v668_v59 = vadd.f32 %v1245_v9, %v444_v25  ;;  %v394_v51 = vmul.f32 %v1215_v36, %v1134_v56 }
  0xf4   :  { %v393_v9 = vmul.f32 %v1215_v36, %v1154_v0  ;;  %v667_v58 = vadd.f32 %v1267_v33, %v443_v19  ;;  %v408_v0 = vmul.f32 %v1215_v36, %v1277_v48  ;;  %v441_v7 = vadd.f32 %v409_v21, %v245_v1 }
  0xf5   :  { %v536_v3 = vpop.permute.xlu1 %535  ;;  %v445_v63 = vadd.f32 %v413_v35, %v249_v52  ;;  %v685_v43 = vmax.f32 %v653_v31, 0.0  ;;  %v684_v31 = vmax.f32 %v652_v32, 0.0 }
  0xf6   :  { %480 = vperm.xlu1 %866, %v446_v45   ;;  %v197_v44 = vpop.permute.xlu0 %196  ;;  %v425_v49 = vadd.f32 %v393_v9, %v229_v28  ;;  %v665_v35 = vadd.f32 %v616_v2, %v441_v7  ;;  %v227_v9 = vmul.f32 %v1217_v38, %v1136_v57  ;;  %v405_v57 = vmul.f32 %v1215_v36, %v1186_v20 }
  0xf7   :  { %v246_v60 = vmul.f32 %v1217_v38, %v197_v44  ;;  %v669_v26 = vadd.f32 %v1220_v41, %v445_v63  ;;  %v700_v44 = vmax.f32 %v668_v59, 0.0  ;;  %v651_v41 = vadd.f32 %v1273_v47, %v427_v16 }
  0xf8   :  { %v426_v63 = vadd.f32 %v394_v51, %v230_v5  ;;  %v699_v59 = vmax.f32 %v667_v58, 0.0  ;;  %v228_v47 = vmul.f32 %v1217_v38, %v1271_v42  ;;  %v649_v48 = vadd.f32 %v536_v3, %v425_v49 }
  0xf9   :  { %v442_v17 = vadd.f32 %v410_v27, %v246_v60  ;;  %v701_v39 = vmax.f32 %v669_v26, 0.0  ;;  %v683_v52 = vmax.f32 %v651_v41, 0.0  ;;  %v697_v53 = vmax.f32 %v665_v35, 0.0 }
  0xfa   :  { %v348_v8 = vpop.permute.xlu1 %347  ;;  %v187_v56 = vpop.permute.xlu0 %186  ;;  %v650_v33 = vadd.f32 %v1291_v29, %v426_v63  ;;  %v681_v2 = vmax.f32 %v649_v48, 0.0  ;;  %v243_v3 = vmul.f32 %v1217_v38, %v1298_v13  ;;  %v391_v60 = vmul.f32 %v1215_v36, %v1178_v14 }
  0xfb   :  { %v244_v12 = vmul.f32 %v1217_v38, %v187_v56  ;;  %807 = vmatprep.subr.mxu0 %v701_v39  ;;  %v666_v61 = vadd.f32 %v1283_v55, %v442_v17  ;;  %v392_v55 = vmul.f32 %v1215_v36, %v1162_v6  ;;  %v407_v6 = vmul.f32 %v1215_v36, %v1172_v11 }
  0xfc   :  { %808 = vmatpush3.msra.mxu0 %v685_v43  ;;  %v682_v29 = vmax.f32 %v650_v33, 0.0  ;;  %v423_v28 = vadd.f32 %v391_v60, %v227_v9  ;;  %v406_v14 = vmul.f32 %v1215_v36, %v348_v8  ;;  %v389_v8 = vmul.f32 %v1215_v36, %v1191_v22 }
  0xfd   :  { %809 = vmatprep.subr.mxu0 %v700_v44  ;;  %v440_v5 = vadd.f32 %v408_v0, %v244_v12  ;;  %v698_v23 = vmax.f32 %v666_v61, 0.0  ;;  %v424_v21 = vadd.f32 %v392_v55, %v228_v47  ;;  %v439_v26 = vadd.f32 %v407_v6, %v243_v3 }
  0xfe   :  { %810 = vmatpush3.msra.mxu0 %v684_v31  ;;  %v177_v17 = vpop.permute.xlu0 %176  ;;  %v225_v47 = vmul.f32 %v1217_v38, %v1128_v54  ;;  %v239_v3 = vmul.f32 %v1217_v38, %v1182_v18 }
  0xff   :  { %v611_v45 = vpop.permute.xlu1 %610  ;;  %811 = vmatprep.subr.mxu0 %v699_v59  ;;  %v242_v43 = vmul.f32 %v1217_v38, %v177_v17 }
 0x100   :  { %v664_v25 = vadd.f32 %v611_v45, %v440_v5  ;;  %812 = vmatpush3.msra.mxu0 %v683_v52  ;;  %v421_v45 = vadd.f32 %v389_v8, %v225_v47 }
 0x101   :  { %813 = vmatprep.subr.mxu0 %v698_v23  ;;  %v438_v63 = vadd.f32 %v406_v14, %v242_v43  ;;  %v385_v43 = vmul.f32 %v1215_v36, %v1210_v34 }
 0x102   :  { %v696_v4 = vmax.f32 %v664_v25, 0.0  ;;  %814 = vmatpush3.msra.mxu0 %v682_v29  ;;  %v167_v41 = vpop.permute.xlu0 %166 }
 0x103   :  { %v531_v19 = vpop.permute.xlu1 %530  ;;  %815 = vmatprep.subr.mxu0 %v697_v53  ;;  %v240_v52 = vmul.f32 %v1217_v38, %v167_v41  ;;  %v237_v41 = vmul.f32 %v1217_v38, %v1180_v15  ;;  %v236_v15 = vmul.f32 %v1217_v38, %v1293_v37 }
 0x104   :  { %v648_v42 = vadd.f32 %v531_v19, %v424_v21  ;;  %816 = vmatpush3.msra.mxu0 %v681_v2 }
 0x105   :  { %817 = vmatprep.subr.mxu0 %v696_v4 }
 0x106   :  { %v680_v27 = vmax.f32 %v648_v42, 0.0  ;;  %v596_v12 = vpop.permute.xlu0 %595 }
 0x107   :  { %v172_v1 = vpop.permute.xlu1 %171 }
 0x108   :  { %818 = vmatpush3.msra.mxu0 %v680_v27  ;;  %v241_v44 = vmul.f32 %v1217_v38, %v172_v1 }
 0x10a   :  { %v437_v56 = vadd.f32 %v405_v57, %v241_v44  ;;  %v221_v44 = vmul.f32 %v1217_v38, %v1107_v46 }
 0x10b   :  { %v606_v51 = vpop.permute.xlu1 %605 }
 0x10c   :  { %v663_v16 = vadd.f32 %v606_v51, %v439_v26  ;;  %v661_v49 = vadd.f32 %v596_v12, %v437_v56  ;;  %v417_v56 = vadd.f32 %v385_v43, %v221_v44 }
 0x10e   :  { %v695_v32 = vmax.f32 %v663_v16, 0.0  ;;  %v693_v35 = vmax.f32 %v661_v49, 0.0 }
 0x10f   :  { %v526_v58 = vpop.permute.xlu1 %525 }
 0x110   :  { %v647_v13 = vadd.f32 %v526_v58, %v423_v28  ;;  %819 = vmatprep.subr.mxu0 %v695_v32 }
 0x112   :  { %v679_v39 = vmax.f32 %v647_v13, 0.0 }
 0x114   :  { %v340_v11 = vpop.permute.xlu1 %339  ;;  %820 = vmatpush3.msra.mxu0 %v679_v39 }
 0x115   :  { %v404_v48 = vmul.f32 %v1215_v36, %v340_v11 }
 0x117   :  { %v436_v25 = vadd.f32 %v404_v48, %v240_v52  ;;  %v1437_v48 = vld [vmem:[#allocation8_spill] sm:$0xff] }
 0x119   :  { %v601_v0 = vpop.permute.xlu1 %600 }
 0x11a   :  { %v662_v7 = vadd.f32 %v601_v0, %v438_v63 }
 0x11c   :  { %v694_v61 = vmax.f32 %v662_v7, 0.0 }
 0x11d   :  { %v521_v33 = vpop.permute.xlu1 %520 }
 0x11e   :  { %v646_v31 = vadd.f32 %v521_v33, %v1269_v40  ;;  %821 = vmatprep.subr.mxu0 %v694_v61  ;;  %v511_v40 = vpop.permute.xlu0 %510 }
 0x11f   :  { %v644_v53 = vadd.f32 %v511_v40, %v1264_v30  ;;  %v223_v30 = vmul.f32 %v1217_v38, %v1118_v50  ;;  %v222_v50 = vmul.f32 %v1217_v38, %v1247_v10 }
 0x120   :  { %v678_v59 = vmax.f32 %v646_v31, 0.0 }
 0x121   :  { %v676_v21 = vmax.f32 %v644_v53, 0.0 }
 0x122   :  { %v336_v5 = vpop.permute.xlu1 %335  ;;  %822 = vmatpush3.msra.mxu0 %v678_v59  ;;  %v581_v60 = vpop.permute.xlu0 %580 }
 0x123   :  { %823 = vmatprep.subr.mxu0 %v693_v35  ;;  %v403_v54 = vmul.f32 %v1215_v36, %v336_v5  ;;  %v658_v16 = vadd.f32 %v581_v60, %v1317_v62 }
 0x125   :  { %v435_v1 = vadd.f32 %v403_v54, %v239_v3  ;;  %v690_v17 = vmax.f32 %v658_v16, 0.0  ;;  %v1439_v54 = vld [vmem:[#allocation6_spill] sm:$0xff] }
 0x126   :  { %v272_v20 = vpop.permute.xlu1 %271  ;;  %v496_v57 = vpop.permute.xlu0 %495 }
 0x127   :  { %v387_v27 = vmul.f32 %v1215_v36, %v272_v20  ;;  %v641_v12 = vadd.f32 %v496_v57, %v417_v56  ;;  %v1436_v20 = vld [vmem:[#allocation5_spill] sm:$0xff] }
 0x128   :  { %v220_v47 = vmul.f32 %v1217_v38, %v1436_v20 }
 0x129   :  { %v419_v9 = vadd.f32 %v387_v27, %v223_v30  ;;  %v673_v33 = vmax.f32 %v641_v12, 0.0 }
 0x12a   :  { %v486_v37 = vpop.permute.xlu0 %485 }
 0x12b   :  { %v516_v23 = vpop.permute.xlu1 %515 }
 0x12c   :  { %v645_v55 = vadd.f32 %v516_v23, %v421_v45  ;;  %v219_v45 = vmul.f32 %v1217_v38, %v1437_v48 }
 0x12e   :  { %v677_v29 = vmax.f32 %v645_v55, 0.0 }
 0x12f   :  { %v591_v2 = vpop.permute.xlu1 %590 }
 0x130   :  { %v660_v4 = vadd.f32 %v591_v2, %v436_v25  ;;  %824 = vmatpush3.msra.mxu0 %v677_v29 }
 0x132   :  { %v692_v22 = vmax.f32 %v660_v4, 0.0 }
 0x134   :  { %v268_v19 = vpop.permute.xlu1 %267  ;;  %825 = vmatprep.subr.mxu0 %v692_v22 }
 0x135   :  { %826 = vmatpush3.msra.mxu0 %v676_v21  ;;  %v386_v18 = vmul.f32 %v1215_v36, %v268_v19  ;;  %v1438_v21 = vld [vmem:[#allocation9_spill] sm:$0xff] }
 0x136   :  { %v234_v19 = vmul.f32 %v1217_v38, %v1438_v21 }
 0x137   :  { %v418_v62 = vadd.f32 %v386_v18, %v222_v50 }
 0x138   :  { %v328_v42 = vpop.permute.xlu1 %327 }
 0x139   :  { %v401_v11 = vmul.f32 %v1215_v36, %v328_v42 }
 0x13b   :  { %v433_v7 = vadd.f32 %v401_v11, %v237_v41 }
 0x13d   :  { %v586_v6 = vpop.permute.xlu1 %585 }
 0x13e   :  { %v659_v26 = vadd.f32 %v586_v6, %v435_v1 }
 0x140   :  { %v691_v51 = vmax.f32 %v659_v26, 0.0 }
 0x141   :  { %v506_v32 = vpop.permute.xlu1 %505 }
 0x142   :  { %v643_v28 = vadd.f32 %v506_v32, %v419_v9  ;;  %827 = vmatprep.subr.mxu0 %v691_v51  ;;  %v1440_v51 = vld [vmem:[#allocation7_spill] sm:$0xff] }
 0x144   :  { %v675_v58 = vmax.f32 %v643_v28, 0.0  ;;  %v707_v28 = vpop.permute.xlu0 %706 }
 0x146   :  { %v324_v13 = vpop.permute.xlu1 %323  ;;  %828 = vmatpush3.msra.mxu0 %v675_v58 }
 0x147   :  { %829 = vmatprep.subr.mxu0 %v690_v17  ;;  %v400_v46 = vmul.f32 %v1215_v36, %v324_v13 }
 0x149   :  { %v432_v35 = vadd.f32 %v400_v46, %v236_v15 }
 0x14a   :  { %v260_v39 = vpop.permute.xlu1 %259 }
 0x14b   :  { %v384_v59 = vmul.f32 %v1215_v36, %v260_v39 }
 0x14d   :  { %v416_v40 = vadd.f32 %v384_v59, %v220_v47 }
 0x14f   :  { %v501_v14 = vpop.permute.xlu1 %500 }
 0x150   :  { %v642_v63 = vadd.f32 %v501_v14, %v418_v62 }
 0x152   :  { %v674_v0 = vmax.f32 %v642_v63, 0.0 }
 0x153   :  { %v576_v10 = vpop.permute.xlu1 %575 }
 0x154   :  { %v657_v61 = vadd.f32 %v576_v10, %v433_v7  ;;  %830 = vmatpush3.msra.mxu0 %v674_v0 }
 0x156   :  { %v689_v34 = vmax.f32 %v657_v61, 0.0 }
 0x158   :  { %v256_v49 = vpop.permute.xlu1 %255  ;;  %831 = vmatprep.subr.mxu0 %v689_v34 }
 0x159   :  { %832 = vmatpush3.msra.mxu0 %v673_v33  ;;  %v383_v5 = vmul.f32 %v1215_v36, %v256_v49 }
 0x15b   :  { %v415_v55 = vadd.f32 %v383_v5, %v219_v45 }
 0x15c   :  { %v316_v31 = vpop.permute.xlu1 %315 }
 0x15d   :  { %v398_v53 = vmul.f32 %v1215_v36, %v316_v31  ;;  %v639_v22 = vadd.f32 %v486_v37, %v415_v55 }
 0x15f   :  { %v430_v27 = vadd.f32 %v398_v53, %v234_v19  ;;  %v671_v6 = vmax.f32 %v639_v22, 0.0 }
 0x161   :  { %v571_v8 = vpop.permute.xlu1 %570 }
 0x162   :  { %v656_v52 = vadd.f32 %v571_v8, %v432_v35 }
 0x164   :  { %v688_v23 = vmax.f32 %v656_v52, 0.0 }
 0x165   :  { %v491_v29 = vpop.permute.xlu1 %490 }
 0x166   :  { %v640_v25 = vadd.f32 %v491_v29, %v416_v40  ;;  %833 = vmatprep.subr.mxu0 %v688_v23 }
 0x168   :  { %v672_v2 = vmax.f32 %v640_v25, 0.0 }
 0x169   :  { %v566_v4 = vpop.permute.xlu1 %565 }
 0x16a   :  { %v655_v42 = vadd.f32 %v566_v4, %v1439_v54  ;;  %834 = vmatpush3.msra.mxu0 %v672_v2 }
 0x16c   :  { %v687_v3 = vmax.f32 %v655_v42, 0.0 }
 0x16d   :  { %v561_v1 = vpop.permute.xlu1 %560 }
 0x16e   :  { %v654_v30 = vadd.f32 %v561_v1, %v430_v27  ;;  %835 = vmatprep.subr.mxu0 %v687_v3 }
 0x16f   :  { %836 = vmatpush3.msra.mxu0 %v671_v6 }
 0x170   :  { %v686_v60 = vmax.f32 %v654_v30, 0.0 }
 0x171   :  { %v481_v26 = vpop.permute.xlu1 %480 }
 0x172   :  { %v638_v36 = vadd.f32 %v481_v26, %v1440_v51  ;;  %837 = vmatprep.subr.mxu0 %v686_v60 }
 0x174   :  { %v670_v9 = vmax.f32 %v638_v36, 0.0 }
 0x176   :  { %838 = vmatpush3.msra.mxu0 %v670_v9 }
 0x177   :  { %785 = vmatmul.mubr.f32.vlgmr.msra.gmra.mxu0 %v1336_v24 }
 0x237   :  { %v839_v38 = vpop.f32.mrf.mxu0 }
 0x239   :  { %v840_v16 = vpop.f32.mrf.mxu0 }
 0x23a   :  { %v841_v32 = vadd.f32 %v840_v16, %v839_v38 }
 0x23c   :  { %v787_v58 = vadd.f32 %v841_v32, %v707_v28 }
 0x23e   :  { %791 = vst.msk [vmem:[#allocation2] sm:$0x3] %vm790_vm0, %v787_v58 }
 0x23f   :  { %879 = shalt.err (!%p876_p4)
}
 0x240   :  { %801 = dma.vmem_to_hbm [thread:$0]  %s799_s3, 32, %s1430_s5, [#allocation3]  }
 0x241   :  { %888 = dma.done.wait [#allocation3], 32  }
 0x242   :  { %889 = vsyncadd [#allocation3], 4294967264 }
 0x243   :  { %805 = vsyncpa [#allocation3], 1 }

</bundles_post_ra>
